<compile_context>
chip_gen: v7x
topology: tpu7x:2x2x1
jax: 0.10.0
libtpu: 0.0.40
codegen_flags: <defaults>
</compile_context>

<pallas_src>
import jax
import jax.numpy as jnp
from jax.experimental import pallas as pl
from jax.experimental.pallas import tpu as pltpu


def discrimer_kernel(x_ref, w1_ref, b1_ref, w2_ref, b2_ref, o_ref):
    # fc1 (MXU, bf16 operands, f32 accumulate) + bias + ReLU (f32 on VPU).
    x = x_ref[...].astype(jnp.bfloat16)                        # (TB, 50)
    h = jnp.dot(x, w1_ref[...], preferred_element_type=jnp.float32)
    h = jnp.maximum(h + b1_ref[...], 0.0)                      # (TB, 512) f32

    # fc2 (MXU, bf16 operands, f32 accumulate) + bias.
    logits = jnp.dot(h.astype(jnp.bfloat16), w2_ref[...],
                     preferred_element_type=jnp.float32)
    logits = logits + b2_ref[...]                              # (TB, 2) f32

    # Closed-form 2-class log_softmax over dim=1 (numerically stable,
    # elementwise only -- avoids a cross-lane reduce over 2/128 valid lanes):
    #   lse = max(l0, l1) + log1p(exp(-|l0 - l1|));  out = logits - lse
    l0 = logits[:, 0:1]
    l1 = logits[:, 1:2]
    m = jnp.maximum(l0, l1)
    lse = m + jnp.log1p(jnp.exp(-jnp.abs(l0 - l1)))            # (TB, 1)
    o_ref[...] = (logits - lse).astype(o_ref.dtype)


def _round_up(n, m):
    return ((n + m - 1) // m) * m


def discrimer_forward(x, w1, b1, w2, b2, *, block_b=1024):
    """x: (B, 50) f32; w1: (50, 512) bf16; b1: (1, 512) f32;
    w2: (512, 2) bf16; b2: (1, 2) f32  ->  (B, 2) f32 log-probs."""
    B, in_dim = x.shape
    hidden = w1.shape[1]
    n_out = w2.shape[1]

    # Tile the batch; shrink the tile for tiny batches, pad so it divides B.
    tb = min(block_b, _round_up(B, 8))
    b_pad = _round_up(B, tb)
    if b_pad != B:
        x = jnp.pad(x, ((0, b_pad - B), (0, 0)))
    grid = (b_pad // tb,)

    cost = pl.CostEstimate(
        flops=2 * b_pad * (in_dim * hidden + hidden * n_out),
        transcendentals=2 * b_pad,
        bytes_accessed=(x.size * 4 + w1.size * 2 + b1.size * 4
                        + w2.size * 2 + b2.size * 4 + b_pad * n_out * 4),
    )

    out = pl.pallas_call(
        discrimer_kernel,
        out_shape=jax.ShapeDtypeStruct((b_pad, n_out), jnp.float32),
        grid_spec=pltpu.PrefetchScalarGridSpec(
            num_scalar_prefetch=0,
            grid=grid,
            in_specs=[
                pl.BlockSpec((tb, in_dim), lambda i: (i, 0)),   # x: batch-tiled
                pl.BlockSpec(w1.shape, lambda i: (0, 0)),       # resident weights
                pl.BlockSpec(b1.shape, lambda i: (0, 0)),
                pl.BlockSpec(w2.shape, lambda i: (0, 0)),
                pl.BlockSpec(b2.shape, lambda i: (0, 0)),
            ],
            out_specs=pl.BlockSpec((tb, n_out), lambda i: (i, 0)),
        ),
        compiler_params=pltpu.CompilerParams(
            dimension_semantics=("parallel",),
        ),
        cost_estimate=cost,
    )(x, w1, b1, w2, b2)

    return out[:B] if b_pad != B else out


def init_params(key, in_dim=50, hidden=512, n_classes=2):
    # Deterministic init mimicking PyTorch's default nn.Linear init
    # (uniform in [-1/sqrt(fan_in), 1/sqrt(fan_in)]).
    k1, k2, k3, k4 = jax.random.split(key, 4)
    bound1 = 1.0 / jnp.sqrt(jnp.float32(in_dim))
    bound2 = 1.0 / jnp.sqrt(jnp.float32(hidden))
    w1 = jax.random.uniform(k1, (in_dim, hidden), jnp.float32, -bound1, bound1)
    b1 = jax.random.uniform(k2, (1, hidden), jnp.float32, -bound1, bound1)
    w2 = jax.random.uniform(k3, (hidden, n_classes), jnp.float32, -bound2, bound2)
    b2 = jax.random.uniform(k4, (1, n_classes), jnp.float32, -bound2, bound2)
    # Weights shipped to the kernel in bf16 (half HBM traffic, native MXU
    # dtype); biases stay f32 for the elementwise path.
    return w1.astype(jnp.bfloat16), b1, w2.astype(jnp.bfloat16), b2


def reference_forward(x, w1_bf16, b1, w2_bf16, b2):
    # Pure-JAX reference matching the kernel's bf16-operand / f32-accumulate
    # matmul precision.
    h = jnp.dot(x.astype(jnp.bfloat16), w1_bf16,
                preferred_element_type=jnp.float32)
    h = jnp.maximum(h + b1, 0.0)
    logits = jnp.dot(h.astype(jnp.bfloat16), w2_bf16,
                     preferred_element_type=jnp.float32) + b2
    return jax.nn.log_softmax(logits, axis=1)


if __name__ == "__main__":
    key = jax.random.PRNGKey(0)
    kx, kp = jax.random.split(key)

    B, IN, HIDDEN, OUT = 8, 50, 512, 2
    x = jax.random.normal(kx, (B, IN), dtype=jnp.float32)
    w1, b1, w2, b2 = init_params(kp, IN, HIDDEN, OUT)

    out = discrimer_forward(x, w1, b1, w2, b2)
    out = jax.block_until_ready(out)

    ref = reference_forward(x, w1, b1, w2, b2)
    assert out.shape == (B, OUT)
    assert jnp.allclose(out, ref, atol=1e-4, rtol=1e-4)
    # Sanity: rows are valid log-probabilities.
    assert jnp.allclose(jnp.sum(jnp.exp(out), axis=1), 1.0, atol=1e-4)

    print("KERNEL_OK")
</pallas_src>

<mosaic_0001>
module attributes {stable_mosaic.version = 11 : i64} {
  func.func @discrimer_kernel(%arg0: i32, %arg1: memref<8x50xf32, #tpu.memory_space<vmem>>, %arg2: memref<50x512xbf16, #tpu.memory_space<vmem>>, %arg3: memref<1x512xf32, #tpu.memory_space<vmem>>, %arg4: memref<512x2xbf16, #tpu.memory_space<vmem>>, %arg5: memref<1x2xf32, #tpu.memory_space<vmem>>, %arg6: memref<8x2xf32, #tpu.memory_space<vmem>>) attributes {dimension_semantics = [#tpu.dimension_semantics<parallel>], iteration_bounds = array<i64: 1>, scalar_prefetch = 0 : i64, scratch_operands = 0 : i64, tpu.core_type = #tpu.core_type<tc>, window_params = [{transform_indices = @transform_0, window_bounds = array<i64: 8, 50>}, {pipeline_mode = #tpu.pipeline_mode<synchronous>, transform_indices = @transform_1, window_bounds = array<i64: 50, 512>}, {pipeline_mode = #tpu.pipeline_mode<synchronous>, transform_indices = @transform_2, window_bounds = array<i64: 1, 512>}, {pipeline_mode = #tpu.pipeline_mode<synchronous>, transform_indices = @transform_3, window_bounds = array<i64: 512, 2>}, {pipeline_mode = #tpu.pipeline_mode<synchronous>, transform_indices = @transform_4, window_bounds = array<i64: 1, 2>}, {transform_indices = @transform_5, window_bounds = array<i64: 8, 2>}]} {
    %c0 = arith.constant 0 : index
    %c0_0 = arith.constant 0 : index
    %0 = vector.load %arg1[%c0, %c0_0] : memref<8x50xf32, #tpu.memory_space<vmem>>, vector<8x50xf32>
    %1 = arith.truncf %0 : vector<8x50xf32> to vector<8x50xbf16>
    %c0_1 = arith.constant 0 : index
    %c0_2 = arith.constant 0 : index
    %2 = vector.load %arg2[%c0_1, %c0_2] : memref<50x512xbf16, #tpu.memory_space<vmem>>, vector<50x512xbf16>
    %cst = arith.constant dense<0.000000e+00> : vector<8x512xf32>
    %3 = tpu.matmul %1, %2, %cst {dimension_numbers = #tpu.dot_dimension_numbers<[1], [0], [0], [1], [0, 0, 1, 1], [], []>} : vector<8x50xbf16>, vector<50x512xbf16>, vector<8x512xf32> -> vector<8x512xf32>
    %c0_3 = arith.constant 0 : index
    %c0_4 = arith.constant 0 : index
    %4 = vector.load %arg3[%c0_3, %c0_4] : memref<1x512xf32, #tpu.memory_space<vmem>>, vector<1x512xf32>
    %5 = vector.broadcast %4 : vector<1x512xf32> to vector<8x512xf32>
    %6 = arith.addf %3, %5 : vector<8x512xf32>
    %cst_5 = arith.constant 0.000000e+00 : f32
    %7 = vector.broadcast %cst_5 : f32 to vector<8x512xf32>
    %8 = arith.maximumf %6, %7 : vector<8x512xf32>
    %9 = arith.truncf %8 : vector<8x512xf32> to vector<8x512xbf16>
    %c0_6 = arith.constant 0 : index
    %c0_7 = arith.constant 0 : index
    %10 = vector.load %arg4[%c0_6, %c0_7] : memref<512x2xbf16, #tpu.memory_space<vmem>>, vector<512x2xbf16>
    %cst_8 = arith.constant dense<0.000000e+00> : vector<8x2xf32>
    %11 = tpu.matmul %9, %10, %cst_8 {dimension_numbers = #tpu.dot_dimension_numbers<[1], [0], [0], [1], [0, 0, 1, 1], [], []>} : vector<8x512xbf16>, vector<512x2xbf16>, vector<8x2xf32> -> vector<8x2xf32>
    %c0_9 = arith.constant 0 : index
    %c0_10 = arith.constant 0 : index
    %12 = vector.load %arg5[%c0_9, %c0_10] : memref<1x2xf32, #tpu.memory_space<vmem>>, vector<1x2xf32>
    %13 = vector.broadcast %12 : vector<1x2xf32> to vector<8x2xf32>
    %14 = arith.addf %11, %13 : vector<8x2xf32>
    %15 = vector.extract_strided_slice %14 {offsets = [0, 0], sizes = [8, 1], strides = [1, 1]} : vector<8x2xf32> to vector<8x1xf32>
    %16 = vector.extract_strided_slice %14 {offsets = [0, 1], sizes = [8, 1], strides = [1, 1]} : vector<8x2xf32> to vector<8x1xf32>
    %17 = arith.maximumf %15, %16 : vector<8x1xf32>
    %18 = arith.subf %15, %16 : vector<8x1xf32>
    %19 = math.absf %18 : vector<8x1xf32>
    %cst_11 = arith.constant 0.000000e+00 : f32
    %20 = vector.broadcast %cst_11 : f32 to vector<8x1xf32>
    %21 = arith.subf %20, %19 : vector<8x1xf32>
    %22 = math.exp %21 : vector<8x1xf32>
    %23 = math.log1p %22 : vector<8x1xf32>
    %24 = arith.addf %17, %23 : vector<8x1xf32>
    %25 = vector.broadcast %24 : vector<8x1xf32> to vector<8x2xf32>
    %26 = arith.subf %14, %25 : vector<8x2xf32>
    %c0_12 = arith.constant 0 : index
    %c0_13 = arith.constant 0 : index
    %27 = vector.load %arg6[%c0_12, %c0_13] : memref<8x2xf32, #tpu.memory_space<vmem>>, vector<8x2xf32>
    tpu.vector_store %arg6[%c0_12, %c0_13], %26 {strides = array<i32>} : memref<8x2xf32, #tpu.memory_space<vmem>>, vector<8x2xf32>,
    return
  }
  func.func @transform_0(%arg0: i32) -> (i32, i32) {
    %c0_i32 = arith.constant 0 : i32
    %c0_i32_0 = arith.constant 0 : i32
    return %arg0, %c0_i32 : i32, i32
  }
  func.func @transform_1(%arg0: i32) -> (i32, i32) {
    %c0_i32 = arith.constant 0 : i32
    %c0_i32_0 = arith.constant 0 : i32
    %c0_i32_1 = arith.constant 0 : i32
    return %c0_i32, %c0_i32_0 : i32, i32
  }
  func.func @transform_2(%arg0: i32) -> (i32, i32) {
    %c0_i32 = arith.constant 0 : i32
    %c0_i32_0 = arith.constant 0 : i32
    %c0_i32_1 = arith.constant 0 : i32
    return %c0_i32, %c0_i32_0 : i32, i32
  }
  func.func @transform_3(%arg0: i32) -> (i32, i32) {
    %c0_i32 = arith.constant 0 : i32
    %c0_i32_0 = arith.constant 0 : i32
    %c0_i32_1 = arith.constant 0 : i32
    return %c0_i32, %c0_i32_0 : i32, i32
  }
  func.func @transform_4(%arg0: i32) -> (i32, i32) {
    %c0_i32 = arith.constant 0 : i32
    %c0_i32_0 = arith.constant 0 : i32
    %c0_i32_1 = arith.constant 0 : i32
    return %c0_i32, %c0_i32_0 : i32, i32
  }
  func.func @transform_5(%arg0: i32) -> (i32, i32) {
    %c0_i32 = arith.constant 0 : i32
    %c0_i32_0 = arith.constant 0 : i32
    return %arg0, %c0_i32 : i32, i32
  }
}

</mosaic_0001>

<bundles_post_ra>
// kernel: tpu_custom_call.1
= control target key start
LH: loop header
LB: loop body
LE: loop exit
PB: predicated region body
PF: predicated region fallthrough
CT: control target
= control target key end

     0   :  { %v769_v1 = vmov 0   ;;  %vm133_vm0 = vcmask 1040384   ;;  %vm129_vm1 = vcmask 408576   ;;  %v39_v55 = vlaneseq  ;;  %s770_s8 = smov 127   ;;  %s951_s1 = inlined_call_operand.vmem [shape: bf16[50,512], index: 1, kind: input, shape index: {}]   ;;  %s952_s0 = inlined_call_operand.vmem [shape: f32[8,50], index: 0, kind: input, shape index: {}]   ;;  %s953_s3 = inlined_call_operand.vmem [shape: bf16[512,2], index: 3, kind: input, shape index: {}]   ;;  %s954_s2 = inlined_call_operand.vmem [shape: f32[1,512], index: 2, kind: input, shape index: {}]   ;;  %s955_s4 = inlined_call_operand.vmem [shape: f32[1,2], index: 4, kind: input, shape index: {}]   ;;  %s956_s5 = inlined_call_operand.vmem [shape: f32[8,2], index: 5, kind: output, shape index: {}]  }
   0x1   :  { %v711_v0 = vld [vmem:[%s951_s1 + $0x4] ss:$16 sps:$4 sm:$0xff]   ;;  %178 = vmatprep.mubr.bf16.mxu0 %v769_v1  ;;  %219 = vmatprep.mubr.bf16.mxu1 %v769_v1  ;;  %v713_v2 = vld [vmem:[%s951_s1 + $0xc] ss:$16 sps:$4 sm:$0xff]   ;;  %v715_v3 = vld [vmem:[%s951_s1] ss:$16 sps:$4 sm:$0xff]  }
   0x2   :  { %710 = vset.pattern.permute.xlu0 %v769_v1  ;;  %146 = vmatprep.subr.bf16.mxu0 %v711_v0  ;;  %v716_v4 = vld [vmem:[%s951_s1 + $0x8] ss:$16 sps:$4 sm:$0xff]   ;;  %v717_v5 = vld [vmem:[%s951_s1 + $0x24] ss:$16 sps:$4 sm:$0xff]   ;;  %v719_v6 = vld [vmem:[%s951_s1 + $0x2c] ss:$16 sps:$4 sm:$0xff]  }
   0x3   :  { %187 = vmatprep.subr.bf16.mxu1 %v713_v2  ;;  %147 = vmatpush1.bf16.msra.mxu0 %v715_v3  ;;  %v721_v7 = vld [vmem:[%s951_s1 + $0x20] ss:$16 sps:$4 sm:$0xff]   ;;  %v722_v8 = vld [vmem:[%s951_s1 + $0x28] ss:$16 sps:$4 sm:$0xff]   ;;  %v723_v9 = vld [vmem:[%s951_s1 + $0x44] ss:$16 sps:$4 sm:$0xff]  }
   0x4   :  { %188 = vmatpush1.bf16.msra.mxu1 %v716_v4  ;;  %148 = vmatprep.subr.bf16.mxu0 %v717_v5  ;;  %v725_v10 = vld [vmem:[%s951_s1 + $0x4c] ss:$16 sps:$4 sm:$0xff]   ;;  %v727_v11 = vld [vmem:[%s951_s1 + $0x40] ss:$16 sps:$4 sm:$0xff]   ;;  %v728_v12 = vld [vmem:[%s951_s1 + $0x48] ss:$16 sps:$4 sm:$0xff]  }
   0x5   :  { %189 = vmatprep.subr.bf16.mxu1 %v719_v6  ;;  %v35_v13 = vld [vmem:[%s951_s1 + $0x60] sm:$0x11]  ;;  %v36_v14 = vld [vmem:[%s951_s1 + $0x68] sm:$0x11]  ;;  %v741_v31 = vld [vmem:[%s953_s3 + $0x50] sm:$0xff]   ;;  %v40_v56 = vshrl.u32 %v39_v55, 7 }
   0x6   :  { %v624_v15 = vcombine.high %v35_v13, %v35_v13  ;;  %v626_v16 = vcombine.high %v36_v14, %v36_v14  ;;  %v623_v17 = vcombine.low %v35_v13, %v35_v13  ;;  %v625_v18 = vcombine.low %v36_v14, %v36_v14  ;;  %v21_v19 = vld [vmem:[%s952_s0] sm:$0xff]  ;;  %v737_v27 = vld [vmem:[%s953_s3 + $0x48] sm:$0xff]   ;;  %v742_v32 = vld [vmem:[%s953_s3 + $0xd0] sm:$0xff]  }
   0x7   :  { %149 = vmatpush1.bf16.msra.mxu0 %v721_v7  ;;  %v733_v20 = vld [vmem:[%s953_s3 + $0x40] sm:$0xff]   ;;  %v22_v25 = vpack.c.bf16 %v21_v19, %v21_v19  ;;  %v738_v28 = vld [vmem:[%s953_s3 + $0xc8] sm:$0xff]   ;;  %v743_v33 = vld [vmem:[%s953_s3 + $0x10] sm:$0xff]   ;;  %v41_v57 = vsub.s32 0, %v40_v56  ;;  %v49_v58 = vsub.s32 2, %v40_v56  ;;  %v45_v60 = vsub.s32 1, %v40_v56 }
   0x8   :  { %190 = vmatpush1.bf16.msra.mxu1 %v722_v8  ;;  %150 = vmatprep.subr.bf16.mxu0 %v723_v9  ;;  %v734_v21 = vld [vmem:[%s953_s3 + $0xc0] sm:$0xff]   ;;  %v135_v22 = vsel %vm133_vm0, %v623_v17, 0  ;;  %v141_v23 = vsel %vm133_vm0, %v625_v18, 0  ;;  %v739_v29 = vld [vmem:[%s953_s3 + $0x8] sm:$0xff]   ;;  %v744_v34 = vld [vmem:[%s953_s3 + $0x90] sm:$0xff]   ;;  %v53_v61 = vsub.s32 3, %v40_v56 }
   0x9   :  { %191 = vmatprep.subr.bf16.mxu1 %v725_v10  ;;  %v735_v24 = vld [vmem:[%s953_s3] sm:$0xff]   ;;  %v740_v30 = vld [vmem:[%s953_s3 + $0x88] sm:$0xff]   ;;  %v745_v35 = vld [vmem:[%s953_s3 + $0x58] sm:$0xff]   ;;  %vm605_vm3 = vcmask 15360  }
   0xa   :  { %v736_v26 = vld [vmem:[%s953_s3 + $0x80] sm:$0xff]   ;;  %v746_v36 = vld [vmem:[%s953_s3 + $0xd8] sm:$0xff]   ;;  %v753_v43 = vld [vmem:[%s953_s3 + $0x68] sm:$0xff]  }
   0xb   :  { %151 = vmatpush1.bf16.msra.mxu0 %v727_v11  ;;  %v747_v37 = vld [vmem:[%s953_s3 + $0x18] sm:$0xff]   ;;  %v749_v39 = vld [vmem:[%s953_s3 + $0x60] sm:$0xff]   ;;  %v754_v44 = vld [vmem:[%s953_s3 + $0xe8] sm:$0xff]  }
   0xc   :  { %192 = vmatpush1.bf16.msra.mxu1 %v728_v12  ;;  %627 = vmatprep.subr.msk.bf16.mxu0 %vm133_vm0, %v624_v15  ;;  %v748_v38 = vld [vmem:[%s953_s3 + $0x98] sm:$0xff]   ;;  %v750_v40 = vld [vmem:[%s953_s3 + $0xe0] sm:$0xff]   ;;  %v755_v45 = vld [vmem:[%s953_s3 + $0x28] sm:$0xff]  }
   0xd   :  { %629 = vmatprep.subr.msk.bf16.mxu1 %vm133_vm0, %v626_v16  ;;  %v751_v41 = vld [vmem:[%s953_s3 + $0x20] sm:$0xff]   ;;  %v756_v46 = vld [vmem:[%s953_s3 + $0xa8] sm:$0xff]   ;;  %v757_v47 = vld [vmem:[%s953_s3 + $0x70] sm:$0xff]  }
   0xe   :  { %v752_v42 = vld [vmem:[%s953_s3 + $0xa0] sm:$0xff]   ;;  %v758_v48 = vld [vmem:[%s953_s3 + $0xf0] sm:$0xff]   ;;  %v761_v51 = vld [vmem:[%s953_s3 + $0x78] sm:$0xff]  }
   0xf   :  { %153 = vmatpush1.bf16.msra.mxu0 %v135_v22  ;;  %v759_v49 = vld [vmem:[%s953_s3 + $0x30] sm:$0xff]   ;;  %v762_v52 = vld [vmem:[%s953_s3 + $0xf8] sm:$0xff]   ;;  %v37_v59 = vld [vmem:[%s954_s2] sm:$0xf] }
  0x10   :  { %194 = vmatpush1.bf16.msra.mxu1 %v141_v23  ;;  %664 = vmatprep.subr.bf16.mxu0 %v733_v20  ;;  %v760_v50 = vld [vmem:[%s953_s3 + $0xb0] sm:$0xff]   ;;  %v763_v53 = vld [vmem:[%s953_s3 + $0x38] sm:$0xff]   ;;  %v42_v62 = vrot.slane %v37_v59, %v41_v57  ;;  %v50_v63 = vrot.slane %v37_v59, %v49_v58  ;;  %v46_v0 = vrot.slane %v37_v59, %v45_v60 }
  0x11   :  { %686 = vmatprep.subr.bf16.mxu1 %v734_v21  ;;  %v764_v54 = vld [vmem:[%s953_s3 + $0xb8] sm:$0xff]   ;;  %v54_v1 = vrot.slane %v37_v59, %v53_v61 }
  0x12   :  { %628 = vmatmul.mubr.msk.bf16.vlgmr.msra.gmra.mrb[0].mxu0 %vm129_vm1, %v22_v25 }
  0x13   :  { %630 = vmatmul.mubr.msk.bf16.vlgmr.msra.gmra.mrb[0].mxu1 %vm129_vm1, %v22_v25  ;;  %665 = vmatpush3.bf16.msra.mxu0 %v735_v24  ;;  %v631_v24 = vld [vmem:[%s955_s4] ss:$0 sm:$0xff] }
  0x14   :  { %687 = vmatpush3.bf16.msra.mxu1 %v736_v26  ;;  %666 = vmatprep.subr.bf16.mxu0 %v737_v27 }
  0x15   :  { %688 = vmatprep.subr.bf16.mxu1 %v738_v28 }
  0x17   :  { %667 = vmatpush3.bf16.msra.mxu0 %v739_v29 }
  0x18   :  { %689 = vmatpush3.bf16.msra.mxu1 %v740_v30  ;;  %668 = vmatprep.subr.bf16.mxu0 %v741_v31 }
  0x19   :  { %690 = vmatprep.subr.bf16.mxu1 %v742_v32 }
  0x1b   :  { %669 = vmatpush3.bf16.msra.mxu0 %v743_v33 }
  0x1c   :  { %691 = vmatpush3.bf16.msra.mxu1 %v744_v34  ;;  %670 = vmatprep.subr.bf16.mxu0 %v745_v35 }
  0x1d   :  { %692 = vmatprep.subr.bf16.mxu1 %v746_v36 }
  0x1f   :  { %671 = vmatpush3.bf16.msra.mxu0 %v747_v37 }
  0x20   :  { %693 = vmatpush3.bf16.msra.mxu1 %v748_v38  ;;  %672 = vmatprep.subr.bf16.mxu0 %v749_v39 }
  0x21   :  { %694 = vmatprep.subr.bf16.mxu1 %v750_v40 }
  0x23   :  { %673 = vmatpush3.bf16.msra.mxu0 %v751_v41 }
  0x24   :  { %695 = vmatpush3.bf16.msra.mxu1 %v752_v42  ;;  %674 = vmatprep.subr.bf16.mxu0 %v753_v43 }
  0x25   :  { %696 = vmatprep.subr.bf16.mxu1 %v754_v44 }
  0x27   :  { %675 = vmatpush3.bf16.msra.mxu0 %v755_v45 }
  0x28   :  { %697 = vmatpush3.bf16.msra.mxu1 %v756_v46  ;;  %676 = vmatprep.subr.bf16.mxu0 %v757_v47 }
  0x29   :  { %698 = vmatprep.subr.bf16.mxu1 %v758_v48 }
  0x2b   :  { %677 = vmatpush3.bf16.msra.mxu0 %v759_v49 }
  0x2c   :  { %699 = vmatpush3.bf16.msra.mxu1 %v760_v50  ;;  %678 = vmatprep.subr.bf16.mxu0 %v761_v51 }
  0x2d   :  { %700 = vmatprep.subr.bf16.mxu1 %v762_v52 }
  0x2f   :  { %679 = vmatpush3.bf16.msra.mxu0 %v763_v53 }
  0x30   :  { %701 = vmatpush3.bf16.msra.mxu1 %v764_v54 }
  0xe5   :  { %v180_v2 = vpop.f32.mrb[0].mxu0 }
  0xe6   :  { %v221_v3 = vpop.f32.mrb[0].mxu1  ;;  %v181_v4 = vadd.f32 %v180_v2, %v42_v62  ;;  %v182_v6 = vpop.f32.mrb[1].mxu0 }
  0xe7   :  { %v222_v5 = vadd.f32 %v221_v3, %v50_v63  ;;  %v223_v7 = vpop.f32.mrb[1].mxu1  ;;  %v183_v8 = vadd.f32 %v182_v6, %v46_v0  ;;  %v184_v10 = vpop.f32.mrb[2].mxu0 }
  0xe8   :  { %v224_v9 = vadd.f32 %v223_v7, %v54_v1  ;;  %v225_v11 = vpop.f32.mrb[2].mxu1  ;;  %v228_v12 = vmax.f32 %v181_v4, 0.0  ;;  %v185_v14 = vpop.f32.mrb[3].mxu0 }
  0xe9   :  { %v230_v13 = vmax.f32 %v222_v5, 0.0  ;;  %v226_v15 = vpop.f32.mrb[3].mxu1  ;;  %v229_v16 = vmax.f32 %v183_v8, 0.0 }
  0xea   :  { %v231_v17 = vmax.f32 %v224_v9, 0.0  ;;  %v232_v21 = vpack.c.bf16 %v228_v12, %v228_v12 }
  0xeb   :  { %v234_v18 = vpack.c.bf16 %v230_v13, %v230_v13  ;;  %v233_v19 = vpack.c.bf16 %v229_v16, %v229_v16 }
  0xec   :  { %v235_v20 = vpack.c.bf16 %v231_v17, %v231_v17 }
  0xed   :  { %531 = vmatprep.mubr.bf16.mxu0 %v233_v19 }
  0xee   :  { %571 = vmatprep.mubr.bf16.mxu1 %v235_v20  ;;  %532 = vmatmul.mubr.bf16.vlgmr.msra.gmra.mrb[4].mxu0 %v232_v21 }
  0xef   :  { %572 = vmatmul.mubr.bf16.vlgmr.msra.gmra.mrb[4].mxu1 %v234_v18 }
 0x1c1   :  { %v680_v22 = vpop.f32.mrb[4].mxu0 }
 0x1c2   :  { %v702_v23 = vpop.f32.mrb[4].mxu1  ;;  %v681_v25 = vpop.f32.mrb[5].mxu0 }
 0x1c3   :  { %v703_v26 = vpop.f32.mrb[5].mxu1  ;;  %v682_v27 = vadd.f32 %v681_v25, %v680_v22  ;;  %v683_v29 = vpop.f32.mrb[6].mxu0 }
 0x1c4   :  { %v704_v28 = vadd.f32 %v703_v26, %v702_v23  ;;  %v705_v30 = vpop.f32.mrb[6].mxu1  ;;  %v684_v31 = vpop.f32.mrb[7].mxu0 }
 0x1c5   :  { %v706_v32 = vpop.f32.mrb[7].mxu1  ;;  %v534_v33 = vadd.f32 %v682_v27, %v631_v24 }
 0x1c7   :  { %v574_v34 = vadd.f32 %v704_v28, %v534_v33 }
 0x1c9   :  { %580 = vrot.lane.b32.xlu0 %v574_v34, %s770_s8 }
 0x23b   :  { %v581_v35 = vpop.permute.xlu0 %580 }
 0x23c   :  { %v584_v36 = vsub.f32 %v574_v34, %v581_v35  ;;  %v583_v48 = vmax.f32 %v574_v34, %v581_v35 }
 0x23e   :  { %v585_v37 = vand.u32 2147483647, %v584_v36 }
 0x240   :  { %v586_v38 = vsub.f32 0.0, %v585_v37 }
 0x242   :  { %v587_v39 = vmul.f32 1.442695, %v586_v38 }
 0x244   :  { %765 = vpow2.f32 %v587_v39 }
 0x24e   :  { %v766_v40 = vpop.eup %765 }
 0x24f   :  { %v589_v41 = vadd.f32 1.0, %v766_v40  ;;  %v592_v42 = vmul.f32 -0.5, %v766_v40  ;;  %v595_v44 = vand.u32 2147483647, %v766_v40 }
 0x251   :  { %767 = vlog2.f32 %v589_v41  ;;  %v593_v43 = vadd.f32 1.0, %v592_v42  ;;  %vm596_vm2 = vcmp.lt.f32.partialorder %v595_v44, 0.0004427343 }
 0x253   :  { %v594_v47 = vmul.f32 %v766_v40, %v593_v43 }
 0x25b   :  { %v768_v45 = vpop.eup %767 }
 0x25c   :  { %v591_v46 = vmul.f32 0.6931472, %v768_v45 }
 0x25e   :  { %v597_v49 = vsel %vm596_vm2, %v594_v47, %v591_v46 }
 0x25f   :  { %v598_v50 = vadd.f32 %v597_v49, %v583_v48 }
 0x261   :  { %601 = vperm.xlu0 %710, %v598_v50  }
 0x2e0   :  { %v602_v51 = vpop.permute.xlu0 %601 }
 0x2e1   :  { %v604_v52 = vsub.f32 %v574_v34, %v602_v51 }
 0x2e3   :  { %606 = vst.msk [vmem:[%s956_s5] sm:$0xff] %vm605_vm3, %v604_v52 }

</bundles_post_ra>
